<compile_context>
chip_gen: v5e
topology: v5e:2x2
jax: 0.10.0
libtpu: 0.0.40
codegen_flags: <defaults>
</compile_context>

<pallas_src>
import jax
import jax.numpy as jnp
from jax.experimental import pallas as pl
from jax.experimental.pallas import tpu as pltpu

NUM_GAUSSIANS = 20
IN_FEATURES = 2
HIDDEN = 64
OUT_FEATURES = 1                        # MDN out_features
HEADS = 3 * NUM_GAUSSIANS               # pi | sigma | mu = 60
HEADS_PADDED = 64                       # fused head padded to 64 rows (rows 60..63 are zero)


def adversary_kernel(xt_ref, w1t_ref, b1_ref, wht_ref, bh_ref, out_ref):
    G = NUM_GAUSSIANS

    # --- hidden layer: h^T = relu(W1^T @ x^T + b1) on the VPU (K=2 would waste the MXU) ---
    xt = xt_ref[...]                                   # (2, TB)  f32
    w1t = w1t_ref[...]                                 # (64, 2)  f32
    h = w1t[:, 0:1] * xt[0:1, :] + w1t[:, 1:2] * xt[1:2, :]       # (64, TB)
    h = jnp.maximum(h + b1_ref[...], 0.0)

    # --- fused heads: one (64 x 64) @ (64 x TB) MXU matmul, bf16 operands / f32 accumulate.
    # Head rows: 0:20 pi logits, 20:40 log-sigma, 40:60 mu, 60:64 zero pad.
    z = jnp.dot(wht_ref[...], h.astype(jnp.bfloat16),
                preferred_element_type=jnp.float32) + bh_ref[...]      # (64, TB) f32

    # --- mask-based full-width epilogue (no narrow slices, no concatenate) ---
    row = jax.lax.broadcasted_iota(jnp.int32, z.shape, 0)
    is_pi = row < G
    is_sigma = (row >= G) & (row < 2 * G)
    is_mu = (row >= 2 * G) & (row < 3 * G)

    m = jnp.max(jnp.where(is_pi, z, -jnp.inf), axis=0, keepdims=True)   # (1, TB)
    arg = jnp.where(is_pi, z - m, jnp.where(is_sigma, z, 0.0))
    e = jnp.exp(arg)                                                    # EUP, whole tile, f32
    denom = jnp.sum(jnp.where(is_pi, e, 0.0), axis=0, keepdims=True)    # (1, TB)
    inv = 1.0 / denom                                                   # exact divide (tiny op)

    out_ref[...] = jnp.where(is_pi, e * inv,
                             jnp.where(is_sigma, e,
                                       jnp.where(is_mu, z, 0.0)))       # single (64, TB) store


def _choose_tb(batch, tb_request):
    """Batch-tile width: multiple of 128 (lane dim), <= padded batch, and small enough that
    the grid has >= 2 steps when the batch allows (v7x megacore)."""
    tb = max(128, (int(tb_request) // 128) * 128)
    b_pad128 = ((batch + 127) // 128) * 128
    tb = min(tb, b_pad128)
    if batch > 128:
        half = ((((batch + 1) // 2) + 127) // 128) * 128
        tb = min(tb, half)
    return tb


def prepare_adversary_params(params):
    """One-time packing for the kernel: fuse & zero-pad the three MDN heads, transpose to the
    (feature, batch) layout, and cast the MXU weight to bf16 (hoisted out of the per-call path)."""
    w_heads = jnp.concatenate([params["wpi"], params["wsig"], params["wmu"]], axis=1)   # (64, 60)
    b_heads = jnp.concatenate([params["bpi"], params["bsig"], params["bmu"]], axis=1)   # (1, 60)
    w_heads = jnp.pad(w_heads, ((0, 0), (0, HEADS_PADDED - HEADS)))
    b_heads = jnp.pad(b_heads, ((0, 0), (0, HEADS_PADDED - HEADS)))
    return {
        "w1t": params["w1"].T,                     # (64, 2)  f32 — first layer stays f32 on VPU
        "b1": params["b1"].T,                      # (64, 1)  f32
        "wht": w_heads.T.astype(jnp.bfloat16),     # (64, 64) bf16 — MXU operand
        "bht": b_heads.T,                          # (64, 1)  f32
    }


def adversary_forward(x, prepared, *, tb=4096):
    """x: (B, 2) float32. Returns (pi (B,G), sigma (B,G,O), mu (B,G,O))."""
    B = x.shape[0]
    G, O = NUM_GAUSSIANS, OUT_FEATURES

    tb = _choose_tb(B, tb)
    n_tiles = pl.cdiv(B, tb)
    B_pad = n_tiles * tb
    if B_pad != B:
        # Padded batch rows (zero x) produce exp(bias) garbage in the padded output columns;
        # they are sliced off below. Do NOT remove the [:B] slices.
        x = jnp.pad(x, ((0, B_pad - B), (0, 0)))
    xt = x.T                                                    # (2, B_pad), lane-dense batch

    out = pl.pallas_call(
        adversary_kernel,
        out_shape=jax.ShapeDtypeStruct((HEADS_PADDED, B_pad), jnp.float32),
        grid=(n_tiles,),
        in_specs=[
            pl.BlockSpec((IN_FEATURES, tb), lambda i: (0, i)),          # x^T tile
            pl.BlockSpec((HIDDEN, IN_FEATURES), lambda i: (0, 0)),      # W1^T (resident)
            pl.BlockSpec((HIDDEN, 1), lambda i: (0, 0)),                # b1 (resident)
            pl.BlockSpec((HEADS_PADDED, HIDDEN), lambda i: (0, 0)),     # fused head W^T, bf16
            pl.BlockSpec((HEADS_PADDED, 1), lambda i: (0, 0)),          # fused head bias
        ],
        out_specs=pl.BlockSpec((HEADS_PADDED, tb), lambda i: (0, i)),
        compiler_params=pltpu.CompilerParams(
            dimension_semantics=("parallel",),        # shard batch tiles across TCs
            vmem_limit_bytes=32 * 1024 * 1024,
        ),
    )(xt, prepared["w1t"], prepared["b1"], prepared["wht"], prepared["bht"])

    pi = out[:G, :B].T                                          # (B, G)
    sigma = out[G:2 * G, :B].T.reshape(B, G, O)                 # (B, G, O)
    mu = out[2 * G:3 * G, :B].T.reshape(B, G, O)                # (B, G, O)
    return pi, sigma, mu


def adversary_reference(x, params):
    """Pure-JAX f32 reference matching the PyTorch forward (grad-reversal = identity fwd)."""
    G, O = NUM_GAUSSIANS, OUT_FEATURES
    B = x.shape[0]
    h = jnp.maximum(x @ params["w1"] + params["b1"], 0.0)
    pi = jax.nn.softmax(h @ params["wpi"] + params["bpi"], axis=1)
    sigma = jnp.exp(h @ params["wsig"] + params["bsig"]).reshape(B, G, O)
    mu = (h @ params["wmu"] + params["bmu"]).reshape(B, G, O)
    return pi, sigma, mu


def init_params(key):
    """Deterministic parameter init. Weights are (in, out); biases kept 2D (1, out)."""
    keys = jax.random.split(key, 8)
    G, O = NUM_GAUSSIANS, OUT_FEATURES

    def lin(kw, kb, fan_in, fan_out):
        bound = 1.0 / jnp.sqrt(float(fan_in))
        w = jax.random.uniform(kw, (fan_in, fan_out), jnp.float32, -bound, bound)
        b = jax.random.uniform(kb, (1, fan_out), jnp.float32, -bound, bound)
        return w, b

    w1, b1 = lin(keys[0], keys[1], IN_FEATURES, HIDDEN)
    wpi, bpi = lin(keys[2], keys[3], HIDDEN, G)
    wsig, bsig = lin(keys[4], keys[5], HIDDEN, G * O)
    wmu, bmu = lin(keys[6], keys[7], HIDDEN, G * O)
    return {
        "w1": w1, "b1": b1,
        "wpi": wpi, "bpi": bpi,
        "wsig": wsig, "bsig": bsig,
        "wmu": wmu, "bmu": bmu,
    }


if __name__ == "__main__":
    key = jax.random.PRNGKey(0)
    kx, kp = jax.random.split(key)

    B = 16
    x = jax.random.normal(kx, (B, IN_FEATURES), dtype=jnp.float32)
    params = init_params(kp)
    prepared = prepare_adversary_params(params)

    pi, sigma, mu = adversary_forward(x, prepared)
    jax.block_until_ready((pi, sigma, mu))

    # shape checks
    assert pi.shape == (B, NUM_GAUSSIANS)
    assert sigma.shape == (B, NUM_GAUSSIANS, OUT_FEATURES)
    assert mu.shape == (B, NUM_GAUSSIANS, OUT_FEATURES)

    # exact-divide softmax: rows sum to 1 to f32 rounding
    assert bool(jnp.all(jnp.abs(jnp.sum(pi, axis=1) - 1.0) < 1e-4))
    assert bool(jnp.all(sigma > 0.0))

    # compare against the f32 reference (tolerance covers the bf16 MXU operands)
    pi_r, sigma_r, mu_r = adversary_reference(x, params)
    assert bool(jnp.allclose(pi, pi_r, rtol=5e-2, atol=2e-2))
    assert bool(jnp.allclose(sigma, sigma_r, rtol=5e-2, atol=2e-2))
    assert bool(jnp.allclose(mu, mu_r, rtol=5e-2, atol=2e-2))

    # exercise a multi-step grid (3 batch tiles of 128)
    B2 = 384
    x2 = jax.random.normal(jax.random.PRNGKey(1), (B2, IN_FEATURES), dtype=jnp.float32)
    pi2, sigma2, mu2 = adversary_forward(x2, prepared, tb=128)
    jax.block_until_ready((pi2, sigma2, mu2))
    pi2_r, sigma2_r, mu2_r = adversary_reference(x2, params)
    assert bool(jnp.all(jnp.abs(jnp.sum(pi2, axis=1) - 1.0) < 1e-4))
    assert bool(jnp.allclose(pi2, pi2_r, rtol=5e-2, atol=2e-2))
    assert bool(jnp.allclose(sigma2, sigma2_r, rtol=5e-2, atol=2e-2))
    assert bool(jnp.allclose(mu2, mu2_r, rtol=5e-2, atol=2e-2))

    print("KERNEL_OK")
</pallas_src>

<mosaic_0001>
module attributes {stable_mosaic.version = 11 : i64} {
  func.func @adversary_kernel(%arg0: i32, %arg1: memref<2x128xf32, #tpu.memory_space<vmem>>, %arg2: memref<64x2xf32, #tpu.memory_space<vmem>>, %arg3: memref<64x1xf32, #tpu.memory_space<vmem>>, %arg4: memref<64x64xbf16, #tpu.memory_space<vmem>>, %arg5: memref<64x1xf32, #tpu.memory_space<vmem>>, %arg6: memref<64x128xf32, #tpu.memory_space<vmem>>) attributes {dimension_semantics = [#tpu.dimension_semantics<parallel>], iteration_bounds = array<i64: 1>, scalar_prefetch = 0 : i64, scratch_operands = 0 : i64, tpu.core_type = #tpu.core_type<tc>, window_params = [{transform_indices = @transform_0, window_bounds = array<i64: 2, 128>}, {pipeline_mode = #tpu.pipeline_mode<synchronous>, transform_indices = @transform_1, window_bounds = array<i64: 64, 2>}, {pipeline_mode = #tpu.pipeline_mode<synchronous>, transform_indices = @transform_2, window_bounds = array<i64: 64, 1>}, {pipeline_mode = #tpu.pipeline_mode<synchronous>, transform_indices = @transform_3, window_bounds = array<i64: 64, 64>}, {pipeline_mode = #tpu.pipeline_mode<synchronous>, transform_indices = @transform_4, window_bounds = array<i64: 64, 1>}, {transform_indices = @transform_5, window_bounds = array<i64: 64, 128>}]} {
    %c0 = arith.constant 0 : index
    %c0_0 = arith.constant 0 : index
    %0 = vector.load %arg1[%c0, %c0_0] : memref<2x128xf32, #tpu.memory_space<vmem>>, vector<2x128xf32>
    %c0_1 = arith.constant 0 : index
    %c0_2 = arith.constant 0 : index
    %1 = vector.load %arg2[%c0_1, %c0_2] : memref<64x2xf32, #tpu.memory_space<vmem>>, vector<64x2xf32>
    %2 = vector.extract_strided_slice %1 {offsets = [0, 0], sizes = [64, 1], strides = [1, 1]} : vector<64x2xf32> to vector<64x1xf32>
    %3 = vector.extract_strided_slice %0 {offsets = [0, 0], sizes = [1, 128], strides = [1, 1]} : vector<2x128xf32> to vector<1x128xf32>
    %4 = vector.broadcast %2 : vector<64x1xf32> to vector<64x128xf32>
    %5 = vector.broadcast %3 : vector<1x128xf32> to vector<64x128xf32>
    %6 = arith.mulf %4, %5 : vector<64x128xf32>
    %7 = vector.extract_strided_slice %1 {offsets = [0, 1], sizes = [64, 1], strides = [1, 1]} : vector<64x2xf32> to vector<64x1xf32>
    %8 = vector.extract_strided_slice %0 {offsets = [1, 0], sizes = [1, 128], strides = [1, 1]} : vector<2x128xf32> to vector<1x128xf32>
    %9 = vector.broadcast %7 : vector<64x1xf32> to vector<64x128xf32>
    %10 = vector.broadcast %8 : vector<1x128xf32> to vector<64x128xf32>
    %11 = arith.mulf %9, %10 : vector<64x128xf32>
    %12 = arith.addf %6, %11 : vector<64x128xf32>
    %c0_3 = arith.constant 0 : index
    %c0_4 = arith.constant 0 : index
    %13 = vector.load %arg3[%c0_3, %c0_4] : memref<64x1xf32, #tpu.memory_space<vmem>>, vector<64x1xf32>
    %14 = vector.broadcast %13 : vector<64x1xf32> to vector<64x128xf32>
    %15 = arith.addf %12, %14 : vector<64x128xf32>
    %cst = arith.constant 0.000000e+00 : f32
    %16 = vector.broadcast %cst : f32 to vector<64x128xf32>
    %17 = arith.maximumf %15, %16 : vector<64x128xf32>
    %c0_5 = arith.constant 0 : index
    %c0_6 = arith.constant 0 : index
    %18 = vector.load %arg4[%c0_5, %c0_6] : memref<64x64xbf16, #tpu.memory_space<vmem>>, vector<64x64xbf16>
    %19 = arith.truncf %17 : vector<64x128xf32> to vector<64x128xbf16>
    %cst_7 = arith.constant dense<0.000000e+00> : vector<64x128xf32>
    %20 = tpu.matmul %18, %19, %cst_7 {dimension_numbers = #tpu.dot_dimension_numbers<[1], [0], [0], [1], [0, 0, 1, 1], [], []>} : vector<64x64xbf16>, vector<64x128xbf16>, vector<64x128xf32> -> vector<64x128xf32>
    %c0_8 = arith.constant 0 : index
    %c0_9 = arith.constant 0 : index
    %21 = vector.load %arg5[%c0_8, %c0_9] : memref<64x1xf32, #tpu.memory_space<vmem>>, vector<64x1xf32>
    %22 = vector.broadcast %21 : vector<64x1xf32> to vector<64x128xf32>
    %23 = arith.addf %20, %22 : vector<64x128xf32>
    %24 = tpu.iota {dimensions = array<i32: 0>} : vector<64x128xi32>
    %c20_i32 = arith.constant 20 : i32
    %25 = vector.broadcast %c20_i32 : i32 to vector<64x128xi32>
    %26 = arith.cmpi slt, %24, %25 : vector<64x128xi32>
    %c20_i32_10 = arith.constant 20 : i32
    %27 = vector.broadcast %c20_i32_10 : i32 to vector<64x128xi32>
    %28 = arith.cmpi sge, %24, %27 : vector<64x128xi32>
    %c40_i32 = arith.constant 40 : i32
    %29 = vector.broadcast %c40_i32 : i32 to vector<64x128xi32>
    %30 = arith.cmpi slt, %24, %29 : vector<64x128xi32>
    %31 = arith.andi %28, %30 : vector<64x128xi1>
    %c40_i32_11 = arith.constant 40 : i32
    %32 = vector.broadcast %c40_i32_11 : i32 to vector<64x128xi32>
    %33 = arith.cmpi sge, %24, %32 : vector<64x128xi32>
    %c60_i32 = arith.constant 60 : i32
    %34 = vector.broadcast %c60_i32 : i32 to vector<64x128xi32>
    %35 = arith.cmpi slt, %24, %34 : vector<64x128xi32>
    %36 = arith.andi %33, %35 : vector<64x128xi1>
    %cst_12 = arith.constant 0xFF800000 : f32
    %37 = vector.broadcast %cst_12 : f32 to vector<64x128xf32>
    %38 = arith.select %26, %23, %37 : vector<64x128xi1>, vector<64x128xf32>
    %cst_13 = arith.constant dense<0xFF800000> : vector<128xf32>
    %39 = vector.multi_reduction <maximumf>, %38, %cst_13 [0] : vector<64x128xf32> to vector<128xf32>
    %40 = vector.shape_cast %39 : vector<128xf32> to vector<1x128xf32>
    %41 = vector.broadcast %40 : vector<1x128xf32> to vector<64x128xf32>
    %42 = arith.subf %23, %41 : vector<64x128xf32>
    %cst_14 = arith.constant 0.000000e+00 : f32
    %43 = vector.broadcast %cst_14 : f32 to vector<64x128xf32>
    %44 = arith.select %31, %23, %43 : vector<64x128xi1>, vector<64x128xf32>
    %45 = arith.select %26, %42, %44 : vector<64x128xi1>, vector<64x128xf32>
    %46 = math.exp %45 : vector<64x128xf32>
    %cst_15 = arith.constant 0.000000e+00 : f32
    %47 = vector.broadcast %cst_15 : f32 to vector<64x128xf32>
    %48 = arith.select %26, %46, %47 : vector<64x128xi1>, vector<64x128xf32>
    %cst_16 = arith.constant dense<0.000000e+00> : vector<128xf32>
    %49 = vector.multi_reduction <add>, %48, %cst_16 [0] : vector<64x128xf32> to vector<128xf32>
    %50 = vector.shape_cast %49 : vector<128xf32> to vector<1x128xf32>
    %cst_17 = arith.constant 1.000000e+00 : f32
    %51 = vector.broadcast %cst_17 : f32 to vector<1x128xf32>
    %52 = arith.divf %51, %50 : vector<1x128xf32>
    %53 = vector.broadcast %52 : vector<1x128xf32> to vector<64x128xf32>
    %54 = arith.mulf %46, %53 : vector<64x128xf32>
    %cst_18 = arith.constant 0.000000e+00 : f32
    %55 = vector.broadcast %cst_18 : f32 to vector<64x128xf32>
    %56 = arith.select %36, %23, %55 : vector<64x128xi1>, vector<64x128xf32>
    %57 = arith.select %31, %46, %56 : vector<64x128xi1>, vector<64x128xf32>
    %58 = arith.select %26, %54, %57 : vector<64x128xi1>, vector<64x128xf32>
    %c0_19 = arith.constant 0 : index
    %c0_20 = arith.constant 0 : index
    %59 = vector.load %arg6[%c0_19, %c0_20] : memref<64x128xf32, #tpu.memory_space<vmem>>, vector<64x128xf32>
    tpu.vector_store %arg6[%c0_19, %c0_20], %58 {strides = array<i32>} : memref<64x128xf32, #tpu.memory_space<vmem>>, vector<64x128xf32>,
    return
  }
  func.func @transform_0(%arg0: i32) -> (i32, i32) {
    %c0_i32 = arith.constant 0 : i32
    %c0_i32_0 = arith.constant 0 : i32
    return %c0_i32, %arg0 : i32, i32
  }
  func.func @transform_1(%arg0: i32) -> (i32, i32) {
    %c0_i32 = arith.constant 0 : i32
    %c0_i32_0 = arith.constant 0 : i32
    %c0_i32_1 = arith.constant 0 : i32
    return %c0_i32, %c0_i32_0 : i32, i32
  }
  func.func @transform_2(%arg0: i32) -> (i32, i32) {
    %c0_i32 = arith.constant 0 : i32
    %c0_i32_0 = arith.constant 0 : i32
    %c0_i32_1 = arith.constant 0 : i32
    return %c0_i32, %c0_i32_0 : i32, i32
  }
  func.func @transform_3(%arg0: i32) -> (i32, i32) {
    %c0_i32 = arith.constant 0 : i32
    %c0_i32_0 = arith.constant 0 : i32
    %c0_i32_1 = arith.constant 0 : i32
    return %c0_i32, %c0_i32_0 : i32, i32
  }
  func.func @transform_4(%arg0: i32) -> (i32, i32) {
    %c0_i32 = arith.constant 0 : i32
    %c0_i32_0 = arith.constant 0 : i32
    %c0_i32_1 = arith.constant 0 : i32
    return %c0_i32, %c0_i32_0 : i32, i32
  }
  func.func @transform_5(%arg0: i32) -> (i32, i32) {
    %c0_i32 = arith.constant 0 : i32
    %c0_i32_0 = arith.constant 0 : i32
    return %c0_i32, %arg0 : i32, i32
  }
}

</mosaic_0001>

<bundles_post_ra>
// kernel: tpu_custom_call.1
= control target key start
LH: loop header
LB: loop body
LE: loop exit
PB: predicated region body
PF: predicated region fallthrough
CT: control target
= control target key end

     0   :  { %v626_v2 = vmov 1   ;;  %v627_v3 = vmov 0   ;;  %s777_s0 = inlined_call_operand.vmem [shape: f32[2,128], index: 0, kind: input, shape index: {}]   ;;  %s778_s1 = inlined_call_operand.vmem [shape: f32[64,2], index: 1, kind: input, shape index: {}]   ;;  %s779_s2 = inlined_call_operand.vmem [shape: f32[64,1], index: 2, kind: input, shape index: {}]   ;;  %s780_s3 = inlined_call_operand.vmem [shape: bf16[64,64], index: 3, kind: input, shape index: {}]   ;;  %s781_s4 = inlined_call_operand.vmem [shape: f32[64,1], index: 4, kind: input, shape index: {}]   ;;  %s782_s5 = inlined_call_operand.hbm [shape: f32[64,128], index: 5, kind: output, shape index: {}]  }
   0x1   :  { %v29_v0 = vld [vmem:[%s778_s1 + $0x30] sm:$0xff]  ;;  %v27_v1 = vld [vmem:[%s778_s1 + $0x20] sm:$0xff]  ;;  %577 = vset.pattern.permute.xlu1 %v626_v2  ;;  %578 = vset.pattern.permute.xlu2 %v627_v3 }
   0x2   :  { %576 = vset.pattern.permute.xlu0 %v627_v3  ;;  %105 = vperm.xlu1 %577, %v29_v0  }
   0x3   :  { %63 = vperm.xlu0 %576, %v29_v0   ;;  %53 = vperm.xlu2 %578, %v27_v1  }
   0x4   :  { %10 = vsyncpa [#allocation3], 0  ;;  %v30_v4 = vld [vmem:[%s778_s1 + $0x38] sm:$0xff]  ;;  %v28_v5 = vld [vmem:[%s778_s1 + $0x28] sm:$0xff]  ;;  %vm273_vm0 = vcmask 523264   ;;  %s523_s24 = sshll.u32 %s782_s5, 4  ;;  %s524_s24 = int_to_ptr.hbm [resolvable:$true] %s523_s24 }
   0x5   :  { %v135_v6 = vld [vmem:[%s779_s2 + $0x30] sm:$0xff]  ;;  %v26_v7 = vld [vmem:[%s778_s1 + $0x18] sm:$0xff]  ;;  %v23_v9 = vld [vmem:[%s778_s1] sm:$0xff]  ;;  %s629_s25 = smov 128   ;;  %s630_s26 = smov 8  }
   0x6   :  { %v25_v8 = vld [vmem:[%s778_s1 + $0x10] sm:$0xff]  ;;  %v136_v10 = vld [vmem:[%s779_s2 + $0x38] sm:$0xff]  ;;  %v134_v11 = vld [vmem:[%s779_s2 + $0x28] sm:$0xff] }
   0x7   :  { %v133_v12 = vld [vmem:[%s779_s2 + $0x20] sm:$0xff]  ;;  %v24_v13 = vld [vmem:[%s778_s1 + $0x8] sm:$0xff]  ;;  %v131_v14 = vld [vmem:[%s779_s2 + $0x10] sm:$0xff] }
   0x8   :  { %v132_v15 = vld [vmem:[%s779_s2 + $0x18] sm:$0xff]  ;;  %v129_v16 = vld [vmem:[%s779_s2] sm:$0xff]  ;;  %v130_v17 = vld [vmem:[%s779_s2 + $0x8] sm:$0xff] }
   0x9   :  { %v206_v18 = vld [vmem:[%s781_s4 + $0x8] sm:$0xff]  ;;  %v207_v19 = vld [vmem:[%s781_s4 + $0x10] sm:$0xff]  ;;  %v208_v20 = vld [vmem:[%s781_s4 + $0x18] sm:$0xff] }
   0xa   :  { %109 = vperm.xlu1 %577, %v30_v4   ;;  %v209_v21 = vld [vmem:[%s781_s4 + $0x20] sm:$0xff]  ;;  %v210_v22 = vld [vmem:[%s781_s4 + $0x28] sm:$0xff]  ;;  %v211_v23 = vld [vmem:[%s781_s4 + $0x30] sm:$0xff] }
   0xb   :  { %68 = vperm.xlu0 %576, %v30_v4   ;;  %58 = vperm.xlu2 %578, %v28_v5   ;;  %v22_v31 = vld [vmem:[%s777_s0] sm:$0x3] }
   0xc   :  { %v730_v32 = vperm.slane %v22_v31, 0  ;;  %v112_v33 = vperm.slane %v22_v31, 1  ;;  %v205_v4 = vld [vmem:[%s781_s4] sm:$0xff] }
  0x12   :  { %101 = vperm.xlu1 %577, %v28_v5  }
  0x13   :  { %169 = vperm.xlu2 %578, %v135_v6   ;;  %48 = vperm.xlu0 %576, %v26_v7  }
  0x1a   :  { %579 = vset.pattern.permute.xlu1 %v627_v3 }
  0x1b   :  { %43 = vperm.xlu2 %578, %v25_v8   ;;  %33 = vperm.xlu0 %576, %v23_v9  }
  0x1c   :  { %174 = vperm.xlu1 %579, %v136_v10  }
  0x23   :  { %581 = vset.pattern.permute.xlu2 %v626_v2  ;;  %584 = vset.pattern.permute.xlu0 %v626_v2 }
  0x24   :  { %580 = vset.pattern.permute.xlu1 %v626_v2  ;;  %93 = vperm.xlu2 %581, %v26_v7  }
  0x25   :  { %97 = vperm.xlu0 %584, %v27_v1   ;;  %89 = vperm.xlu1 %580, %v25_v8  }
  0x2c   :  { %583 = vset.pattern.permute.xlu2 %v627_v3 }
  0x2d   :  { %582 = vset.pattern.permute.xlu1 %v627_v3  ;;  %164 = vperm.xlu2 %583, %v134_v11  }
  0x2e   :  { %159 = vperm.xlu1 %582, %v133_v12   ;;  %85 = vperm.xlu0 %584, %v24_v13  }
  0x35   :  { %585 = vset.pattern.permute.xlu2 %v626_v2 }
  0x36   :  { %38 = vperm.xlu1 %582, %v24_v13   ;;  %81 = vperm.xlu2 %585, %v23_v9  }
  0x37   :  { %587 = vset.pattern.permute.xlu0 %v627_v3 }
  0x38   :  { %215 = vperm.xlu0 %587, %v205_v4  }
  0x3e   :  { %149 = vperm.xlu1 %582, %v131_v14   ;;  %586 = vset.pattern.permute.xlu2 %v627_v3 }
  0x3f   :  { %154 = vperm.xlu2 %586, %v132_v15  }
  0x46   :  { %139 = vperm.xlu1 %582, %v129_v16  }
  0x47   :  { %144 = vperm.xlu2 %586, %v130_v17   ;;  %v212_v17 = vld [vmem:[%s781_s4 + $0x38] sm:$0xff] }
  0x48   :  { %250 = vperm.xlu0 %587, %v212_v17  }
  0x4e   :  { %220 = vperm.xlu1 %582, %v206_v18  }
  0x4f   :  { %225 = vperm.xlu2 %586, %v207_v19  }
  0x56   :  { %230 = vperm.xlu1 %582, %v208_v20  }
  0x57   :  { %235 = vperm.xlu2 %586, %v209_v21  }
  0x5d   :  { %v54_v24 = vpop.permute.xlu2 %53 }
  0x5e   :  { %240 = vperm.xlu1 %582, %v210_v22   ;;  %v76_v58 = vmul.f32 %v730_v32, %v54_v24 }
  0x5f   :  { %245 = vperm.xlu2 %586, %v211_v23  }
  0x65   :  { %v59_v25 = vpop.permute.xlu2 %58 }
  0x66   :  { %v77_v55 = vmul.f32 %v730_v32, %v59_v25 }
  0x6d   :  { %v170_v28 = vpop.permute.xlu2 %169 }
  0x74   :  { %v106_v26 = vpop.permute.xlu1 %105 }
  0x75   :  { %v64_v27 = vpop.permute.xlu0 %63  ;;  %v119_v35 = vmul.f32 %v112_v33, %v106_v26  ;;  %v44_v37 = vpop.permute.xlu2 %43 }
  0x76   :  { %v78_v36 = vmul.f32 %v730_v32, %v64_v27  ;;  %v74_v10 = vmul.f32 %v730_v32, %v44_v37 }
  0x78   :  { %v127_v39 = vadd.f32 %v119_v35, %v78_v36  ;;  %v557_v35 = vld [vmem:[%s780_s3 + $0x10] sm:$0xff]  ;;  %v558_v36 = vld [vmem:[%s780_s3 + $0x18] sm:$0xff] }
  0x7a   :  { %v183_v42 = vadd.f32 %v170_v28, %v127_v39 }
  0x7c   :  { %v110_v29 = vpop.permute.xlu1 %109  ;;  %v191_v48 = vmax.f32 %v183_v42, 0.0 }
  0x7d   :  { %v69_v30 = vpop.permute.xlu0 %68  ;;  %v120_v40 = vmul.f32 %v112_v33, %v110_v29 }
  0x7e   :  { %v79_v41 = vmul.f32 %v730_v32, %v69_v30  ;;  %v94_v43 = vpop.permute.xlu2 %93 }
  0x7f   :  { %v116_v5 = vmul.f32 %v112_v33, %v94_v43 }
  0x80   :  { %v128_v44 = vadd.f32 %v120_v40, %v79_v41  ;;  %v315_v40 = vlaneseq }
  0x82   :  { %v316_v43 = vshrl.u32 %v315_v40, 7 }
  0x84   :  { %v102_v34 = vpop.permute.xlu1 %101 }
  0x85   :  { %v49_v38 = vpop.permute.xlu0 %48  ;;  %v118_v51 = vmul.f32 %v112_v33, %v102_v34 }
  0x86   :  { %v75_v6 = vmul.f32 %v730_v32, %v49_v38 }
  0x87   :  { %v165_v53 = vpop.permute.xlu2 %164  ;;  %v126_v56 = vadd.f32 %v118_v51, %v77_v55 }
  0x88   :  { %v124_v11 = vadd.f32 %v116_v5, %v75_v6 }
  0x89   :  { %v182_v59 = vadd.f32 %v165_v53, %v126_v56 }
  0x8b   :  { %v190_v0 = vmax.f32 %v182_v59, 0.0 }
  0x8d   :  { %v34_v45 = vpop.permute.xlu0 %33 }
  0x8e   :  { %v175_v46 = vpop.permute.xlu1 %174  ;;  %v72_v23 = vmul.f32 %v730_v32, %v34_v45 }
  0x8f   :  { %v184_v47 = vadd.f32 %v175_v46, %v128_v44  ;;  %v758_v46 = vadd.s32 16, %v316_v43 }
  0x90   :  { %v82_v63 = vpop.permute.xlu2 %81 }
  0x91   :  { %v192_v49 = vmax.f32 %v184_v47, 0.0  ;;  %v113_v19 = vmul.f32 %v112_v33, %v82_v63  ;;  %vm326_vm1 = vcmp.lt.s32.totalorder %v758_v46, 20  ;;  %vm334_vm3 = vcmp.ge.s32.totalorder %v758_v46, 20 }
  0x93   :  { %v204_v50 = vpack.c.bf16 %v192_v49, %v191_v48  ;;  %v121_v27 = vadd.f32 %v113_v19, %v72_v23 }
  0x95   :  { %290 = vmatpush.bf16.msra.mxu0 %v204_v50  ;;  %559 = vmatpush.bf16.msra.mxu1 %v204_v50 }
  0x96   :  { %560 = vmatpush.bf16.msra.mxu2 %v204_v50  ;;  %561 = vmatpush.bf16.msra.mxu3 %v204_v50 }
  0x97   :  { %v90_v52 = vpop.permute.xlu1 %89  ;;  %v98_v54 = vpop.permute.xlu0 %97 }
  0x98   :  { %v117_v57 = vmul.f32 %v112_v33, %v98_v54  ;;  %v115_v7 = vmul.f32 %v112_v33, %v90_v52 }
  0x99   :  { %v155_v8 = vpop.permute.xlu2 %154 }
  0x9a   :  { %v125_v60 = vadd.f32 %v117_v57, %v76_v58  ;;  %v180_v12 = vadd.f32 %v155_v8, %v124_v11  ;;  %v123_v15 = vadd.f32 %v115_v7, %v74_v10 }
  0x9c   :  { %v188_v20 = vmax.f32 %v180_v12, 0.0 }
  0xa0   :  { %v160_v61 = vpop.permute.xlu1 %159  ;;  %v86_v9 = vpop.permute.xlu0 %85 }
  0xa1   :  { %v181_v62 = vadd.f32 %v160_v61, %v125_v60  ;;  %v114_v14 = vmul.f32 %v112_v33, %v86_v9  ;;  %v145_v25 = vpop.permute.xlu2 %144  ;;  %v555_v33 = vld [vmem:[%s780_s3] sm:$0xff]  ;;  %v323_v61 = vadd.s32 56, %v316_v43 }
  0xa3   :  { %v189_v1 = vmax.f32 %v181_v62, 0.0  ;;  %vm371_vm2 = vcmp.lt.s32.totalorder %v323_v61, 60 }
  0xa5   :  { %v203_v2 = vpack.c.bf16 %v190_v0, %v189_v1 }
  0xa7   :  { %291 = vmatpush.bf16.msra.mxu0 %v203_v2  ;;  %562 = vmatpush.bf16.msra.mxu1 %v203_v2 }
  0xa8   :  { %563 = vmatpush.bf16.msra.mxu2 %v203_v2  ;;  %564 = vmatpush.bf16.msra.mxu3 %v203_v2  ;;  %v39_v3 = vpop.permute.xlu1 %38 }
  0xa9   :  { %v73_v13 = vmul.f32 %v730_v32, %v39_v3  ;;  %v556_v32 = vld [vmem:[%s780_s3 + $0x8] sm:$0xff]  ;;  %v226_v37 = vpop.permute.xlu2 %225  ;;  %s628_s3 = smov [#allocation2]  }
  0xaa   :  { %v216_v45 = vpop.permute.xlu0 %215  ;;  %s521_s21 = sshll.u32 %s628_s3, 4  ;;  %s522_s21 = int_to_ptr.vmem [resolvable:$true] %s521_s21 }
  0xab   :  { %v122_v21 = vadd.f32 %v114_v14, %v73_v13 }
  0xad   :  { %v178_v26 = vadd.f32 %v145_v25, %v122_v21 }
  0xaf   :  { %v186_v31 = vmax.f32 %v178_v26, 0.0 }
  0xb0   :  { %v150_v16 = vpop.permute.xlu1 %149 }
  0xb1   :  { %v179_v18 = vadd.f32 %v150_v16, %v123_v15  ;;  %v236_v39 = vpop.permute.xlu2 %235 }
  0xb3   :  { %v187_v22 = vmax.f32 %v179_v18, 0.0 }
  0xb5   :  { %v202_v24 = vpack.c.bf16 %v188_v20, %v187_v22 }
  0xb7   :  { %292 = vmatpush.bf16.msra.mxu0 %v202_v24  ;;  %565 = vmatpush.bf16.msra.mxu1 %v202_v24 }
  0xb8   :  { %566 = vmatpush.bf16.msra.mxu2 %v202_v24  ;;  %567 = vmatpush.bf16.msra.mxu3 %v202_v24  ;;  %v140_v28 = vpop.permute.xlu1 %139 }
  0xb9   :  { %v177_v29 = vadd.f32 %v140_v28, %v121_v27  ;;  %v246_v47 = vpop.permute.xlu2 %245 }
  0xba   :  { %v251_v1 = vpop.permute.xlu0 %250 }
  0xbb   :  { %v185_v30 = vmax.f32 %v177_v29, 0.0 }
  0xbd   :  { %v201_v34 = vpack.c.bf16 %v186_v31, %v185_v30 }
  0xbf   :  { %293 = vmatpush.bf16.msra.mxu0 %v201_v34  ;;  %568 = vmatpush.bf16.msra.mxu1 %v201_v34 }
  0xc0   :  { %569 = vmatpush.bf16.msra.mxu2 %v201_v34  ;;  %570 = vmatpush.bf16.msra.mxu3 %v201_v34  ;;  %v221_v38 = vpop.permute.xlu1 %220 }
  0xc2   :  { %551 = vmatmul.msk.bf16.vlgmr.msra.gmra.mxu0 %vm273_vm0, %v555_v33  ;;  %552 = vmatmul.msk.bf16.vlgmr.msra.gmra.mxu1 %vm273_vm0, %v556_v32 }
  0xc3   :  { %553 = vmatmul.msk.bf16.vlgmr.msra.gmra.mxu2 %vm273_vm0, %v557_v35  ;;  %554 = vmatmul.msk.bf16.vlgmr.msra.gmra.mxu3 %vm273_vm0, %v558_v36 }
  0xc8   :  { %v231_v44 = vpop.permute.xlu1 %230 }
  0xd0   :  { %v241_v0 = vpop.permute.xlu1 %240 }
 0x13f   :  { %v295_v41 = vpop.f32.mrf.mxu0  ;;  %v300_v42 = vpop.f32.mrf.mxu1 }
 0x140   :  { %v301_v50 = vadd.f32 %v300_v42, %v226_v37  ;;  %v296_v55 = vadd.f32 %v295_v41, %v216_v45 }
 0x142   :  { %v382_v62 = vsel %vm326_vm1, %v301_v50, -inf  ;;  %v411_v18 = vsel %vm334_vm3, %v301_v50, 0.0 }
 0x146   :  { %v305_v48 = vpop.f32.mrf.mxu2  ;;  %v310_v49 = vpop.f32.mrf.mxu3 }
 0x147   :  { %v306_v51 = vadd.f32 %v305_v48, %v236_v39  ;;  %v311_v52 = vadd.f32 %v310_v49, %v246_v47  ;;  %v297_v53 = vpop.f32.mrf.mxu0  ;;  %v302_v54 = vpop.f32.mrf.mxu1 }
 0x148   :  { %v298_v56 = vadd.f32 %v297_v53, %v221_v38  ;;  %v303_v57 = vadd.f32 %v302_v54, %v231_v44 }
 0x149   :  { %v433_v58 = vmul.f32 1.442695, %v306_v51  ;;  %515 = vst [vmem:[#allocation2 + $0x30] sm:$0xff] %v311_v52 }
 0x14a   :  { %v392_v59 = vmax.f32 %v296_v55, %v298_v56  ;;  %v431_v60 = vmul.f32 1.442695, %v303_v57 }
 0x14b   :  { %588 = vpow2.f32 %v433_v58 }
 0x14c   :  { %v394_v63 = vmax.f32 %v392_v59, %v382_v62  ;;  %590 = vpow2.f32 %v431_v60 }
 0x14e   :  { %v395_v2 = vrot.slane %v394_v63, 4  ;;  %v307_v3 = vpop.f32.mrf.mxu2  ;;  %v312_v4 = vpop.f32.mrf.mxu3 }
 0x14f   :  { %v308_v5 = vadd.f32 %v307_v3, %v241_v0  ;;  %v313_v6 = vadd.f32 %v312_v4, %v251_v1 }
 0x150   :  { %v396_v7 = vmax.f32 %v394_v63, %v395_v2 }
 0x151   :  { %v589_v8 = vpop.eup %588  ;;  %514 = vst [vmem:[#allocation2 + $0x28] sm:$0xff] %v308_v5  ;;  %v492_v9 = vsel %vm371_vm2, %v313_v6, 0.0 }
 0x152   :  { %v591_v10 = vpop.eup %590  ;;  %513 = vst [vmem:[#allocation2 + $0x20] sm:$0xff] %v589_v8  ;;  %v397_v11 = vrot.slane %v396_v7, 2 }
 0x153   :  { %512 = vst [vmem:[#allocation2 + $0x18] sm:$0xff] %v591_v10 }
 0x154   :  { %v398_v12 = vmax.f32 %v396_v7, %v397_v11  ;;  %516 = vst [vmem:[#allocation2 + $0x38] sm:$0xff] %v492_v9 }
 0x156   :  { %v399_v13 = vrot.slane %v398_v12, 1 }
 0x158   :  { %v400_v14 = vmax.f32 %v398_v12, %v399_v13 }
 0x15a   :  { %v401_v15 = vsub.f32 %v296_v55, %v400_v14  ;;  %v402_v16 = vsub.f32 %v298_v56, %v400_v14  ;;  %v403_v17 = vsub.f32 %v301_v50, %v400_v14 }
 0x15c   :  { %v419_v19 = vsel %vm326_vm1, %v403_v17, %v411_v18  ;;  %v425_v20 = vmul.f32 1.442695, %v401_v15  ;;  %v427_v21 = vmul.f32 1.442695, %v402_v16 }
 0x15d   :  { %v429_v22 = vmul.f32 1.442695, %v419_v19 }
 0x15e   :  { %592 = vpow2.f32 %v425_v20 }
 0x15f   :  { %594 = vpow2.f32 %v427_v21 }
 0x160   :  { %596 = vpow2.f32 %v429_v22 }
 0x164   :  { %v593_v23 = vpop.eup %592 }
 0x165   :  { %v595_v24 = vpop.eup %594 }
 0x166   :  { %v597_v25 = vpop.eup %596  ;;  %v449_v26 = vadd.f32 %v595_v24, %v593_v23 }
 0x167   :  { %v443_v27 = vsel %vm326_vm1, %v597_v25, 0.0  ;;  %v495_v49 = vsel %vm334_vm3, %v597_v25, 0.0 }
 0x168   :  { %v450_v28 = vadd.f32 %v449_v26, %v443_v27 }
 0x16a   :  { %v456_v29 = vrot.slane %v450_v28, 4 }
 0x16c   :  { %v457_v30 = vadd.f32 %v456_v29, %v450_v28 }
 0x16e   :  { %v458_v31 = vrot.slane %v457_v30, 2 }
 0x170   :  { %v459_v34 = vadd.f32 %v458_v31, %v457_v30 }
 0x172   :  { %v460_v33 = vrot.slane %v459_v34, 1 }
 0x174   :  { %v461_v32 = vadd.f32 %v460_v33, %v459_v34 }
 0x176   :  { %598 = vrcp.f32 %v461_v32  ;;  %v473_v38 = vand.u32 2147483648, %v461_v32  ;;  %v471_v40 = vand.u32 2147483647, %v461_v32  ;;  %vm467_vm5 = vweird.f32 %v461_v32 }
 0x178   :  { %v474_v42 = vor.u32 1.1754944e-38, %v473_v38  ;;  %vm472_vm7 = vcmp.eq.f32.partialorder %v471_v40, 8.507059e+37 }
 0x17c   :  { %v599_v35 = vpop.eup %598 }
 0x17d   :  { %v463_v36 = vmul.f32 %v599_v35, %v461_v32  ;;  %vm468_vm4 = vweird.f32 %v599_v35 }
 0x17e   :  { %vm469_vm6 = vmor %vm467_vm5, %vm468_vm4 }
 0x17f   :  { %v464_v37 = vsub.f32 1.0, %v463_v36 }
 0x181   :  { %v465_v39 = vmul.f32 %v599_v35, %v464_v37 }
 0x183   :  { %v466_v41 = vadd.f32 %v599_v35, %v465_v39 }
 0x185   :  { %v470_v43 = vsel %vm469_vm6, %v599_v35, %v466_v41 }
 0x186   :  { %v475_v44 = vsel %vm472_vm7, %v474_v42, %v470_v43 }
 0x187   :  { %v477_v45 = vmul.f32 %v593_v23, %v475_v44  ;;  %v478_v47 = vmul.f32 %v595_v24, %v475_v44  ;;  %v479_v48 = vmul.f32 %v597_v25, %v475_v44 }
 0x189   :  { %v503_v50 = vsel %vm326_vm1, %v479_v48, %v495_v49  ;;  %509 = vst [vmem:[#allocation2] sm:$0xff] %v477_v45 }
 0x18a   :  { %510 = vst [vmem:[#allocation2 + $0x8] sm:$0xff] %v478_v47 }
 0x18b   :  { %511 = vst [vmem:[#allocation2 + $0x10] sm:$0xff] %v503_v50 }
 0x18c   :  { %529 = dma.vmem_to_hbm [thread:$0]  %s522_s21, 1024, %s524_s24, [#allocation3], %s629_s25, %s629_s25, %s630_s26  }
 0x18d   :  { %624 = dma.done.wait [#allocation3], 1024  }
 0x18e   :  { %625 = vsyncadd [#allocation3], 4294966272 }
 0x18f   :  { %534 = vsyncpa [#allocation3], 1 }

</bundles_post_ra>
